<compile_context>
chip_gen: v6e
topology: v6e:2x2x1
jax: 0.10.0
libtpu: 0.0.40
codegen_flags: <defaults>
</compile_context>

<pallas_src>
import jax
import jax.numpy as jnp
from jax.experimental import pallas as pl
from jax.experimental.pallas import tpu as pltpu

_LANE = 128
_SUBLANE = 8


def _round_up(x, m):
    return ((x + m - 1) // m) * m


def _leaky_relu(x, slope=0.01):
    # torch.nn.LeakyReLU default negative_slope = 0.01
    return jnp.where(x >= 0, x, slope * x)


def init_params(key, obs_dim, act_dim, hidden_dims):
    """Deterministic init mimicking torch.nn.Linear defaults: U(-1/sqrt(fan_in), ...).

    Weights stored as (in_dim, out_dim) == PyTorch weight.T, biases as (1, out_dim).
    """
    input_dim = obs_dim + act_dim + act_dim
    all_dims = [input_dim] + list(hidden_dims) + [2]
    params = []
    for in_dim, out_dim in zip(all_dims[:-1], all_dims[1:]):
        key, kw, kb = jax.random.split(key, 3)
        bound = 1.0 / float(in_dim) ** 0.5
        w = jax.random.uniform(kw, (in_dim, out_dim), jnp.float32, -bound, bound)
        b = jax.random.uniform(kb, (1, out_dim), jnp.float32, -bound, bound)
        params.append((w, b))
    return params


def _pack_params(params, obs_dim, act_dim):
    """Transpose to feature-major and pack every weight/bias into one f32 buffer.

    Each piece lives in its own 8-row-aligned slab starting at lane 0; the buffer is
    (total_rows, lanes) with lanes = round_up(max piece width, 128).  Returns the
    packed array, a static layout (row offsets), and h0 (first hidden width).
    """
    w0, b0 = params[0]
    h0 = w0.shape[1]
    w0_obs_t = w0[:obs_dim, :].T                                   # (h0, obs_dim)
    w0_act_t = w0[obs_dim:obs_dim + act_dim, :].T                  # (h0, act_dim)
    # Fold the first-layer bias into the one-hot columns: pre_i uses b0 + W0_oh[:, i].
    ohb_t = w0[obs_dim + act_dim:, :].T + b0.T                     # (h0, act_dim)

    pieces = [w0_obs_t, w0_act_t, ohb_t]
    for (w, b) in params[1:]:
        pieces.append(w.T)                                         # (out, in)
        pieces.append(b.T)                                         # (out, 1)

    lanes = _round_up(max(int(p.shape[1]) for p in pieces), _LANE)
    offs = []
    row = 0
    for p in pieces:
        offs.append(row)
        row += _round_up(int(p.shape[0]), _SUBLANE)
    total_rows = _round_up(row, _SUBLANE)

    packed = jnp.zeros((total_rows, lanes), jnp.float32)
    for off, p in zip(offs, pieces):
        packed = packed.at[off:off + p.shape[0], :p.shape[1]].set(p.astype(jnp.float32))

    layers = []
    idx = 3
    for (w, b) in params[1:]:
        # (w_row, out_dim, in_dim, b_row)
        layers.append((offs[idx], int(w.shape[1]), int(w.shape[0]), offs[idx + 1]))
        idx += 2

    layout = {
        "w0_obs": offs[0],
        "w0_act": offs[1],
        "ohb": offs[2],
        "layers": tuple(layers),
    }
    return packed, layout, h0


def _make_kernel(layout, h0, obs_dim, act_dim):
    r_obs = layout["w0_obs"]
    r_act = layout["w0_act"]
    r_ohb = layout["ohb"]
    layers = layout["layers"]
    out_pad = _round_up(act_dim, _SUBLANE)

    def kernel(w_ref, obs_ref, noise_ref, out_ref, pre_ref):
        tb = obs_ref.shape[0]

        # ---- hoisted, off the serial chain ---------------------------------------
        # obs contribution to the first layer: W0_obs (h0, obs_dim) @ obs_blk^T.
        # obs stays batch-major; the transposed contraction is handled by the MXU.
        obs_proj = jax.lax.dot_general(
            w_ref[r_obs:r_obs + h0, 0:obs_dim], obs_ref[...],
            (((1,), (1,)), ((), ())),
            preferred_element_type=jnp.float32)                    # (h0, tb)
        # Per-step first-layer bias pre_i = obs_proj + (b0 + W0_oh[:, i]); stash in a
        # VMEM scratch so only act_proj stays live in vregs across the serial loop.
        for i in range(act_dim):
            pre_ref[i] = obs_proj + w_ref[r_ohb:r_ohb + h0, i:i + 1]

        noise_t = noise_ref[...]                                   # (act_dim, tb)

        # Running contribution of `act` to the first hidden layer, via rank-1 updates.
        act_proj = jnp.zeros((h0, tb), jnp.float32)
        rows = []

        # Static unroll: act_dim is tiny.
        # NOTE: switch to lax.fori_loop(..., unroll=k) if act_dim grows large (>~8).
        for i in range(act_dim):
            h = _leaky_relu(pre_ref[i] + act_proj)
            for (wr, od, idm, br) in layers:
                # Weights/biases are re-loaded from VMEM each step (cheap vld, short
                # live ranges) rather than held across the whole unrolled loop.
                h = _leaky_relu(
                    jnp.dot(w_ref[wr:wr + od, 0:idm], h,
                            preferred_element_type=jnp.float32)
                    + w_ref[br:br + od, 0:1])

            mean = h[0:1, :]                                       # (1, tb)
            std = jnp.exp(h[1:2, :])
            # Mirrors "if logstd.exp() == 0: next_dim = mean else: Normal(...).sample()"
            # (reachable when exp underflows to 0 in f32).
            next_dim = jnp.where(std == 0.0, mean, mean + std * noise_t[i:i + 1, :])
            rows.append(next_dim)

            if i + 1 < act_dim:
                # act[:, i] := next_dim  ->  rank-1 update of the first-layer input.
                act_proj = act_proj + w_ref[r_act:r_act + h0, i:i + 1] * next_dim

        # Assemble the batch-major output tile in-kernel: pad to 8 sublanes so the
        # final transpose is a native (8,128) vxpose, then store (tb, act_dim).
        rows = rows + [jnp.zeros((1, tb), jnp.float32)] * (out_pad - act_dim)
        out_fm = jnp.concatenate(rows, axis=0)                     # (out_pad, tb)
        out_ref[...] = out_fm.T[:, :act_dim]                       # (tb, act_dim)

    return kernel


def _choose_block_b(batch, target=512):
    """Batch tile: big (default 512) but guaranteeing >=2 grid steps when the batch
    spans more than one lane tile, so v7x's two TensorCores both get work."""
    b_lane = _round_up(batch, _LANE)
    if b_lane <= _LANE:
        return _LANE
    half = _round_up((b_lane + 1) // 2, _LANE)
    return max(_LANE, min(target, half))


def autoregressive_forward(obs, noise, params, obs_dim, act_dim, *, block_b=None):
    """Full autoregressive forward pass in one Pallas kernel.

    obs:   (B, obs_dim) float32, batch-major (no wrapper transpose needed).
    noise: (act_dim, B) float32 standard-normal draws, feature-major (one row per
           autoregressive step) so no transpose is ever materialized.
    Returns (B, act_dim) float32.
    """
    B = obs.shape[0]
    assert noise.shape == (act_dim, B)

    packed, layout, h0 = _pack_params(params, obs_dim, act_dim)

    if block_b is None:
        block_b = _choose_block_b(B)
    b_pad = _round_up(B, block_b)

    if b_pad != B:
        obs_p = jnp.pad(obs, ((0, b_pad - B), (0, 0)))
        noise_p = jnp.pad(noise, ((0, 0), (0, b_pad - B)))
    else:
        obs_p, noise_p = obs, noise

    kernel = _make_kernel(layout, h0, obs_dim, act_dim)

    out = pl.pallas_call(
        kernel,
        out_shape=jax.ShapeDtypeStruct((b_pad, act_dim), jnp.float32),
        grid=(b_pad // block_b,),
        in_specs=[
            # Single packed weight operand, constant block index -> fetched once,
            # VMEM-resident across all grid steps (one DMA instead of ~10 tiny ones).
            pl.BlockSpec(packed.shape, lambda i: (0, 0)),
            pl.BlockSpec((block_b, obs_dim), lambda i: (i, 0)),
            pl.BlockSpec((act_dim, block_b), lambda i: (0, i)),
        ],
        out_specs=pl.BlockSpec((block_b, act_dim), lambda i: (i, 0)),
        scratch_shapes=[pltpu.VMEM((act_dim, h0, block_b), jnp.float32)],
        compiler_params=pltpu.CompilerParams(
            dimension_semantics=("parallel",)),
    )(packed, obs_p, noise_p)

    return out if b_pad == B else out[:B]


def reference_forward(obs, noise, params, obs_dim, act_dim):
    """Pure-JAX mirror of the PyTorch forward (same noise draws) for validation."""
    B = obs.shape[0]
    act = jnp.zeros((B, act_dim), dtype=jnp.float32)
    eye = jnp.eye(act_dim, dtype=jnp.float32)
    for i in range(act_dim):
        one_hot = jnp.tile(eye[i][None, :], (B, 1))
        x = jnp.concatenate([obs, act, one_hot], axis=1)
        for (w, b) in params:
            x = _leaky_relu(
                jnp.dot(x, w, precision=jax.lax.Precision.HIGHEST) + b)
        mean, logstd = x[:, 0:1], x[:, 1:2]
        std = jnp.exp(logstd)
        next_dim = jnp.where(std == 0.0, mean, mean + std * noise[i][:, None])
        act = jnp.concatenate([act[:, :i], next_dim, act[:, i + 1:]], axis=1)
    return act


if __name__ == "__main__":
    # Small shapes consistent with the module's forward.
    batch = 2
    obs_dim = 16
    act_dim = 4
    hidden_dims = [32, 32]

    key = jax.random.PRNGKey(0)
    k_obs, k_noise, k_params = jax.random.split(key, 3)

    obs = jax.random.normal(k_obs, (batch, obs_dim), dtype=jnp.float32)
    # torch Normal(mean, std).sample() is stochastic; the standard-normal draws are
    # generated deterministically here (feature-major: one row per step).
    # TODO(synk): in-kernel pltpu.prng_* sampling could replace the external draws.
    noise = jax.random.normal(k_noise, (act_dim, batch), dtype=jnp.float32)
    params = init_params(k_params, obs_dim, act_dim, hidden_dims)

    out = autoregressive_forward(obs, noise, params, obs_dim, act_dim)
    out = jax.block_until_ready(out)
    ref = reference_forward(obs, noise, params, obs_dim, act_dim)
    assert out.shape == (batch, act_dim)
    assert jnp.allclose(out, ref, atol=1e-4, rtol=1e-4), (out, ref)

    # Exercise the multi-step grid + padding path (2 grid steps on the "parallel" axis).
    batch2 = 300
    k_obs2, k_noise2 = jax.random.split(k_obs)
    obs2 = jax.random.normal(k_obs2, (batch2, obs_dim), dtype=jnp.float32)
    noise2 = jax.random.normal(k_noise2, (act_dim, batch2), dtype=jnp.float32)
    out2 = jax.block_until_ready(
        autoregressive_forward(obs2, noise2, params, obs_dim, act_dim))
    ref2 = reference_forward(obs2, noise2, params, obs_dim, act_dim)
    assert out2.shape == (batch2, act_dim)
    assert jnp.allclose(out2, ref2, atol=1e-4, rtol=1e-4)

    print("KERNEL_OK")
</pallas_src>

<mosaic_0001>
module attributes {stable_mosaic.version = 11 : i64} {
  func.func @kernel(%arg0: i32, %arg1: memref<176x128xf32, #tpu.memory_space<vmem>>, %arg2: memref<128x16xf32, #tpu.memory_space<vmem>>, %arg3: memref<4x128xf32, #tpu.memory_space<vmem>>, %arg4: memref<128x4xf32, #tpu.memory_space<vmem>>, %arg5: memref<4x32x128xf32, #tpu.memory_space<vmem>>) attributes {dimension_semantics = [#tpu.dimension_semantics<parallel>], iteration_bounds = array<i64: 1>, scalar_prefetch = 0 : i64, scratch_operands = 1 : i64, tpu.core_type = #tpu.core_type<tc>, window_params = [{pipeline_mode = #tpu.pipeline_mode<synchronous>, transform_indices = @transform_0, window_bounds = array<i64: 176, 128>}, {transform_indices = @transform_1, window_bounds = array<i64: 128, 16>}, {transform_indices = @transform_2, window_bounds = array<i64: 4, 128>}, {transform_indices = @transform_3, window_bounds = array<i64: 128, 4>}]} {
    %c0 = arith.constant 0 : index
    %c0_0 = arith.constant 0 : index
    %0 = vector.load %arg1[%c0, %c0_0] : memref<176x128xf32, #tpu.memory_space<vmem>>, vector<32x16xf32>
    %c0_1 = arith.constant 0 : index
    %c0_2 = arith.constant 0 : index
    %1 = vector.load %arg2[%c0_1, %c0_2] : memref<128x16xf32, #tpu.memory_space<vmem>>, vector<128x16xf32>
    %cst = arith.constant dense<0.000000e+00> : vector<32x128xf32>
    %2 = tpu.matmul %0, %1, %cst {dimension_numbers = #tpu.dot_dimension_numbers<[1], [1], [0], [0], [0, 0, 1, 0], [], []>} : vector<32x16xf32>, vector<128x16xf32>, vector<32x128xf32> -> vector<32x128xf32>
    %c64 = arith.constant 64 : index
    %c0_3 = arith.constant 0 : index
    %3 = vector.load %arg1[%c64, %c0_3] : memref<176x128xf32, #tpu.memory_space<vmem>>, vector<32x1xf32>
    %4 = vector.broadcast %3 : vector<32x1xf32> to vector<32x128xf32>
    %5 = arith.addf %2, %4 : vector<32x128xf32>
    %c0_4 = arith.constant 0 : index
    %c0_5 = arith.constant 0 : index
    %c0_6 = arith.constant 0 : index
    %6 = vector.load %arg5[%c0_4, %c0_5, %c0_6] : memref<4x32x128xf32, #tpu.memory_space<vmem>>, vector<1x32x128xf32>
    %7 = vector.shape_cast %6 : vector<1x32x128xf32> to vector<32x128xf32>
    %8 = vector.shape_cast %5 : vector<32x128xf32> to vector<1x32x128xf32>
    tpu.vector_store %arg5[%c0_4, %c0_5, %c0_6], %8 {strides = array<i32>} : memref<4x32x128xf32, #tpu.memory_space<vmem>>, vector<1x32x128xf32>,
    %c64_7 = arith.constant 64 : index
    %c1 = arith.constant 1 : index
    %9 = vector.load %arg1[%c64_7, %c1] : memref<176x128xf32, #tpu.memory_space<vmem>>, vector<32x1xf32>
    %10 = vector.broadcast %9 : vector<32x1xf32> to vector<32x128xf32>
    %11 = arith.addf %2, %10 : vector<32x128xf32>
    %c1_8 = arith.constant 1 : index
    %c0_9 = arith.constant 0 : index
    %c0_10 = arith.constant 0 : index
    %12 = vector.load %arg5[%c1_8, %c0_9, %c0_10] : memref<4x32x128xf32, #tpu.memory_space<vmem>>, vector<1x32x128xf32>
    %13 = vector.shape_cast %12 : vector<1x32x128xf32> to vector<32x128xf32>
    %14 = vector.shape_cast %11 : vector<32x128xf32> to vector<1x32x128xf32>
    tpu.vector_store %arg5[%c1_8, %c0_9, %c0_10], %14 {strides = array<i32>} : memref<4x32x128xf32, #tpu.memory_space<vmem>>, vector<1x32x128xf32>,
    %c64_11 = arith.constant 64 : index
    %c2 = arith.constant 2 : index
    %15 = vector.load %arg1[%c64_11, %c2] : memref<176x128xf32, #tpu.memory_space<vmem>>, vector<32x1xf32>
    %16 = vector.broadcast %15 : vector<32x1xf32> to vector<32x128xf32>
    %17 = arith.addf %2, %16 : vector<32x128xf32>
    %c2_12 = arith.constant 2 : index
    %c0_13 = arith.constant 0 : index
    %c0_14 = arith.constant 0 : index
    %18 = vector.load %arg5[%c2_12, %c0_13, %c0_14] : memref<4x32x128xf32, #tpu.memory_space<vmem>>, vector<1x32x128xf32>
    %19 = vector.shape_cast %18 : vector<1x32x128xf32> to vector<32x128xf32>
    %20 = vector.shape_cast %17 : vector<32x128xf32> to vector<1x32x128xf32>
    tpu.vector_store %arg5[%c2_12, %c0_13, %c0_14], %20 {strides = array<i32>} : memref<4x32x128xf32, #tpu.memory_space<vmem>>, vector<1x32x128xf32>,
    %c64_15 = arith.constant 64 : index
    %c3 = arith.constant 3 : index
    %21 = vector.load %arg1[%c64_15, %c3] : memref<176x128xf32, #tpu.memory_space<vmem>>, vector<32x1xf32>
    %22 = vector.broadcast %21 : vector<32x1xf32> to vector<32x128xf32>
    %23 = arith.addf %2, %22 : vector<32x128xf32>
    %c3_16 = arith.constant 3 : index
    %c0_17 = arith.constant 0 : index
    %c0_18 = arith.constant 0 : index
    %24 = vector.load %arg5[%c3_16, %c0_17, %c0_18] : memref<4x32x128xf32, #tpu.memory_space<vmem>>, vector<1x32x128xf32>
    %25 = vector.shape_cast %24 : vector<1x32x128xf32> to vector<32x128xf32>
    %26 = vector.shape_cast %23 : vector<32x128xf32> to vector<1x32x128xf32>
    tpu.vector_store %arg5[%c3_16, %c0_17, %c0_18], %26 {strides = array<i32>} : memref<4x32x128xf32, #tpu.memory_space<vmem>>, vector<1x32x128xf32>,
    %c0_19 = arith.constant 0 : index
    %c0_20 = arith.constant 0 : index
    %27 = vector.load %arg3[%c0_19, %c0_20] : memref<4x128xf32, #tpu.memory_space<vmem>>, vector<4x128xf32>
    %cst_21 = arith.constant 0.000000e+00 : f32
    %28 = vector.broadcast %cst_21 : f32 to vector<32x128xf32>
    %c0_22 = arith.constant 0 : index
    %c0_23 = arith.constant 0 : index
    %c0_24 = arith.constant 0 : index
    %29 = vector.load %arg5[%c0_22, %c0_23, %c0_24] : memref<4x32x128xf32, #tpu.memory_space<vmem>>, vector<1x32x128xf32>
    %30 = vector.shape_cast %29 : vector<1x32x128xf32> to vector<32x128xf32>
    %31 = arith.addf %30, %28 : vector<32x128xf32>
    %cst_25 = arith.constant 0.000000e+00 : f32
    %32 = vector.broadcast %cst_25 : f32 to vector<32x128xf32>
    %33 = arith.cmpf oge, %31, %32 : vector<32x128xf32>
    %cst_26 = arith.constant 0.00999999977 : f32
    %34 = vector.broadcast %cst_26 : f32 to vector<32x128xf32>
    %35 = arith.mulf %34, %31 : vector<32x128xf32>
    %36 = arith.select %33, %31, %35 : vector<32x128xi1>, vector<32x128xf32>
    %c96 = arith.constant 96 : index
    %c0_27 = arith.constant 0 : index
    %37 = vector.load %arg1[%c96, %c0_27] : memref<176x128xf32, #tpu.memory_space<vmem>>, vector<32x32xf32>
    %cst_28 = arith.constant dense<0.000000e+00> : vector<32x128xf32>
    %38 = tpu.matmul %37, %36, %cst_28 {dimension_numbers = #tpu.dot_dimension_numbers<[1], [0], [0], [1], [0, 0, 1, 1], [], []>} : vector<32x32xf32>, vector<32x128xf32>, vector<32x128xf32> -> vector<32x128xf32>
    %c128 = arith.constant 128 : index
    %c0_29 = arith.constant 0 : index
    %39 = vector.load %arg1[%c128, %c0_29] : memref<176x128xf32, #tpu.memory_space<vmem>>, vector<32x1xf32>
    %40 = vector.broadcast %39 : vector<32x1xf32> to vector<32x128xf32>
    %41 = arith.addf %38, %40 : vector<32x128xf32>
    %cst_30 = arith.constant 0.000000e+00 : f32
    %42 = vector.broadcast %cst_30 : f32 to vector<32x128xf32>
    %43 = arith.cmpf oge, %41, %42 : vector<32x128xf32>
    %cst_31 = arith.constant 0.00999999977 : f32
    %44 = vector.broadcast %cst_31 : f32 to vector<32x128xf32>
    %45 = arith.mulf %44, %41 : vector<32x128xf32>
    %46 = arith.select %43, %41, %45 : vector<32x128xi1>, vector<32x128xf32>
    %c160 = arith.constant 160 : index
    %c0_32 = arith.constant 0 : index
    %47 = vector.load %arg1[%c160, %c0_32] : memref<176x128xf32, #tpu.memory_space<vmem>>, vector<2x32xf32>
    %cst_33 = arith.constant dense<0.000000e+00> : vector<2x128xf32>
    %48 = tpu.matmul %47, %46, %cst_33 {dimension_numbers = #tpu.dot_dimension_numbers<[1], [0], [0], [1], [0, 0, 1, 1], [], []>} : vector<2x32xf32>, vector<32x128xf32>, vector<2x128xf32> -> vector<2x128xf32>
    %c168 = arith.constant 168 : index
    %c0_34 = arith.constant 0 : index
    %49 = vector.load %arg1[%c168, %c0_34] : memref<176x128xf32, #tpu.memory_space<vmem>>, vector<2x1xf32>
    %50 = vector.broadcast %49 : vector<2x1xf32> to vector<2x128xf32>
    %51 = arith.addf %48, %50 : vector<2x128xf32>
    %cst_35 = arith.constant 0.000000e+00 : f32
    %52 = vector.broadcast %cst_35 : f32 to vector<2x128xf32>
    %53 = arith.cmpf oge, %51, %52 : vector<2x128xf32>
    %cst_36 = arith.constant 0.00999999977 : f32
    %54 = vector.broadcast %cst_36 : f32 to vector<2x128xf32>
    %55 = arith.mulf %54, %51 : vector<2x128xf32>
    %56 = arith.select %53, %51, %55 : vector<2x128xi1>, vector<2x128xf32>
    %57 = vector.extract_strided_slice %56 {offsets = [0, 0], sizes = [1, 128], strides = [1, 1]} : vector<2x128xf32> to vector<1x128xf32>
    %58 = vector.extract_strided_slice %56 {offsets = [1, 0], sizes = [1, 128], strides = [1, 1]} : vector<2x128xf32> to vector<1x128xf32>
    %59 = math.exp %58 : vector<1x128xf32>
    %cst_37 = arith.constant 0.000000e+00 : f32
    %60 = vector.broadcast %cst_37 : f32 to vector<1x128xf32>
    %61 = arith.cmpf oeq, %59, %60 : vector<1x128xf32>
    %62 = vector.extract_strided_slice %27 {offsets = [0, 0], sizes = [1, 128], strides = [1, 1]} : vector<4x128xf32> to vector<1x128xf32>
    %63 = arith.mulf %59, %62 : vector<1x128xf32>
    %64 = arith.addf %57, %63 : vector<1x128xf32>
    %65 = arith.select %61, %57, %64 : vector<1x128xi1>, vector<1x128xf32>
    %c32 = arith.constant 32 : index
    %c0_38 = arith.constant 0 : index
    %66 = vector.load %arg1[%c32, %c0_38] : memref<176x128xf32, #tpu.memory_space<vmem>>, vector<32x1xf32>
    %67 = vector.broadcast %66 : vector<32x1xf32> to vector<32x128xf32>
    %68 = vector.broadcast %65 : vector<1x128xf32> to vector<32x128xf32>
    %69 = arith.mulf %67, %68 : vector<32x128xf32>
    %70 = arith.addf %28, %69 : vector<32x128xf32>
    %c1_39 = arith.constant 1 : index
    %c0_40 = arith.constant 0 : index
    %c0_41 = arith.constant 0 : index
    %71 = vector.load %arg5[%c1_39, %c0_40, %c0_41] : memref<4x32x128xf32, #tpu.memory_space<vmem>>, vector<1x32x128xf32>
    %72 = vector.shape_cast %71 : vector<1x32x128xf32> to vector<32x128xf32>
    %73 = arith.addf %72, %70 : vector<32x128xf32>
    %cst_42 = arith.constant 0.000000e+00 : f32
    %74 = vector.broadcast %cst_42 : f32 to vector<32x128xf32>
    %75 = arith.cmpf oge, %73, %74 : vector<32x128xf32>
    %cst_43 = arith.constant 0.00999999977 : f32
    %76 = vector.broadcast %cst_43 : f32 to vector<32x128xf32>
    %77 = arith.mulf %76, %73 : vector<32x128xf32>
    %78 = arith.select %75, %73, %77 : vector<32x128xi1>, vector<32x128xf32>
    %c96_44 = arith.constant 96 : index
    %c0_45 = arith.constant 0 : index
    %79 = vector.load %arg1[%c96_44, %c0_45] : memref<176x128xf32, #tpu.memory_space<vmem>>, vector<32x32xf32>
    %cst_46 = arith.constant dense<0.000000e+00> : vector<32x128xf32>
    %80 = tpu.matmul %79, %78, %cst_46 {dimension_numbers = #tpu.dot_dimension_numbers<[1], [0], [0], [1], [0, 0, 1, 1], [], []>} : vector<32x32xf32>, vector<32x128xf32>, vector<32x128xf32> -> vector<32x128xf32>
    %c128_47 = arith.constant 128 : index
    %c0_48 = arith.constant 0 : index
    %81 = vector.load %arg1[%c128_47, %c0_48] : memref<176x128xf32, #tpu.memory_space<vmem>>, vector<32x1xf32>
    %82 = vector.broadcast %81 : vector<32x1xf32> to vector<32x128xf32>
    %83 = arith.addf %80, %82 : vector<32x128xf32>
    %cst_49 = arith.constant 0.000000e+00 : f32
    %84 = vector.broadcast %cst_49 : f32 to vector<32x128xf32>
    %85 = arith.cmpf oge, %83, %84 : vector<32x128xf32>
    %cst_50 = arith.constant 0.00999999977 : f32
    %86 = vector.broadcast %cst_50 : f32 to vector<32x128xf32>
    %87 = arith.mulf %86, %83 : vector<32x128xf32>
    %88 = arith.select %85, %83, %87 : vector<32x128xi1>, vector<32x128xf32>
    %c160_51 = arith.constant 160 : index
    %c0_52 = arith.constant 0 : index
    %89 = vector.load %arg1[%c160_51, %c0_52] : memref<176x128xf32, #tpu.memory_space<vmem>>, vector<2x32xf32>
    %cst_53 = arith.constant dense<0.000000e+00> : vector<2x128xf32>
    %90 = tpu.matmul %89, %88, %cst_53 {dimension_numbers = #tpu.dot_dimension_numbers<[1], [0], [0], [1], [0, 0, 1, 1], [], []>} : vector<2x32xf32>, vector<32x128xf32>, vector<2x128xf32> -> vector<2x128xf32>
    %c168_54 = arith.constant 168 : index
    %c0_55 = arith.constant 0 : index
    %91 = vector.load %arg1[%c168_54, %c0_55] : memref<176x128xf32, #tpu.memory_space<vmem>>, vector<2x1xf32>
    %92 = vector.broadcast %91 : vector<2x1xf32> to vector<2x128xf32>
    %93 = arith.addf %90, %92 : vector<2x128xf32>
    %cst_56 = arith.constant 0.000000e+00 : f32
    %94 = vector.broadcast %cst_56 : f32 to vector<2x128xf32>
    %95 = arith.cmpf oge, %93, %94 : vector<2x128xf32>
    %cst_57 = arith.constant 0.00999999977 : f32
    %96 = vector.broadcast %cst_57 : f32 to vector<2x128xf32>
    %97 = arith.mulf %96, %93 : vector<2x128xf32>
    %98 = arith.select %95, %93, %97 : vector<2x128xi1>, vector<2x128xf32>
    %99 = vector.extract_strided_slice %98 {offsets = [0, 0], sizes = [1, 128], strides = [1, 1]} : vector<2x128xf32> to vector<1x128xf32>
    %100 = vector.extract_strided_slice %98 {offsets = [1, 0], sizes = [1, 128], strides = [1, 1]} : vector<2x128xf32> to vector<1x128xf32>
    %101 = math.exp %100 : vector<1x128xf32>
    %cst_58 = arith.constant 0.000000e+00 : f32
    %102 = vector.broadcast %cst_58 : f32 to vector<1x128xf32>
    %103 = arith.cmpf oeq, %101, %102 : vector<1x128xf32>
    %104 = vector.extract_strided_slice %27 {offsets = [1, 0], sizes = [1, 128], strides = [1, 1]} : vector<4x128xf32> to vector<1x128xf32>
    %105 = arith.mulf %101, %104 : vector<1x128xf32>
    %106 = arith.addf %99, %105 : vector<1x128xf32>
    %107 = arith.select %103, %99, %106 : vector<1x128xi1>, vector<1x128xf32>
    %c32_59 = arith.constant 32 : index
    %c1_60 = arith.constant 1 : index
    %108 = vector.load %arg1[%c32_59, %c1_60] : memref<176x128xf32, #tpu.memory_space<vmem>>, vector<32x1xf32>
    %109 = vector.broadcast %108 : vector<32x1xf32> to vector<32x128xf32>
    %110 = vector.broadcast %107 : vector<1x128xf32> to vector<32x128xf32>
    %111 = arith.mulf %109, %110 : vector<32x128xf32>
    %112 = arith.addf %70, %111 : vector<32x128xf32>
    %c2_61 = arith.constant 2 : index
    %c0_62 = arith.constant 0 : index
    %c0_63 = arith.constant 0 : index
    %113 = vector.load %arg5[%c2_61, %c0_62, %c0_63] : memref<4x32x128xf32, #tpu.memory_space<vmem>>, vector<1x32x128xf32>
    %114 = vector.shape_cast %113 : vector<1x32x128xf32> to vector<32x128xf32>
    %115 = arith.addf %114, %112 : vector<32x128xf32>
    %cst_64 = arith.constant 0.000000e+00 : f32
    %116 = vector.broadcast %cst_64 : f32 to vector<32x128xf32>
    %117 = arith.cmpf oge, %115, %116 : vector<32x128xf32>
    %cst_65 = arith.constant 0.00999999977 : f32
    %118 = vector.broadcast %cst_65 : f32 to vector<32x128xf32>
    %119 = arith.mulf %118, %115 : vector<32x128xf32>
    %120 = arith.select %117, %115, %119 : vector<32x128xi1>, vector<32x128xf32>
    %c96_66 = arith.constant 96 : index
    %c0_67 = arith.constant 0 : index
    %121 = vector.load %arg1[%c96_66, %c0_67] : memref<176x128xf32, #tpu.memory_space<vmem>>, vector<32x32xf32>
    %cst_68 = arith.constant dense<0.000000e+00> : vector<32x128xf32>
    %122 = tpu.matmul %121, %120, %cst_68 {dimension_numbers = #tpu.dot_dimension_numbers<[1], [0], [0], [1], [0, 0, 1, 1], [], []>} : vector<32x32xf32>, vector<32x128xf32>, vector<32x128xf32> -> vector<32x128xf32>
    %c128_69 = arith.constant 128 : index
    %c0_70 = arith.constant 0 : index
    %123 = vector.load %arg1[%c128_69, %c0_70] : memref<176x128xf32, #tpu.memory_space<vmem>>, vector<32x1xf32>
    %124 = vector.broadcast %123 : vector<32x1xf32> to vector<32x128xf32>
    %125 = arith.addf %122, %124 : vector<32x128xf32>
    %cst_71 = arith.constant 0.000000e+00 : f32
    %126 = vector.broadcast %cst_71 : f32 to vector<32x128xf32>
    %127 = arith.cmpf oge, %125, %126 : vector<32x128xf32>
    %cst_72 = arith.constant 0.00999999977 : f32
    %128 = vector.broadcast %cst_72 : f32 to vector<32x128xf32>
    %129 = arith.mulf %128, %125 : vector<32x128xf32>
    %130 = arith.select %127, %125, %129 : vector<32x128xi1>, vector<32x128xf32>
    %c160_73 = arith.constant 160 : index
    %c0_74 = arith.constant 0 : index
    %131 = vector.load %arg1[%c160_73, %c0_74] : memref<176x128xf32, #tpu.memory_space<vmem>>, vector<2x32xf32>
    %cst_75 = arith.constant dense<0.000000e+00> : vector<2x128xf32>
    %132 = tpu.matmul %131, %130, %cst_75 {dimension_numbers = #tpu.dot_dimension_numbers<[1], [0], [0], [1], [0, 0, 1, 1], [], []>} : vector<2x32xf32>, vector<32x128xf32>, vector<2x128xf32> -> vector<2x128xf32>
    %c168_76 = arith.constant 168 : index
    %c0_77 = arith.constant 0 : index
    %133 = vector.load %arg1[%c168_76, %c0_77] : memref<176x128xf32, #tpu.memory_space<vmem>>, vector<2x1xf32>
    %134 = vector.broadcast %133 : vector<2x1xf32> to vector<2x128xf32>
    %135 = arith.addf %132, %134 : vector<2x128xf32>
    %cst_78 = arith.constant 0.000000e+00 : f32
    %136 = vector.broadcast %cst_78 : f32 to vector<2x128xf32>
    %137 = arith.cmpf oge, %135, %136 : vector<2x128xf32>
    %cst_79 = arith.constant 0.00999999977 : f32
    %138 = vector.broadcast %cst_79 : f32 to vector<2x128xf32>
    %139 = arith.mulf %138, %135 : vector<2x128xf32>
    %140 = arith.select %137, %135, %139 : vector<2x128xi1>, vector<2x128xf32>
    %141 = vector.extract_strided_slice %140 {offsets = [0, 0], sizes = [1, 128], strides = [1, 1]} : vector<2x128xf32> to vector<1x128xf32>
    %142 = vector.extract_strided_slice %140 {offsets = [1, 0], sizes = [1, 128], strides = [1, 1]} : vector<2x128xf32> to vector<1x128xf32>
    %143 = math.exp %142 : vector<1x128xf32>
    %cst_80 = arith.constant 0.000000e+00 : f32
    %144 = vector.broadcast %cst_80 : f32 to vector<1x128xf32>
    %145 = arith.cmpf oeq, %143, %144 : vector<1x128xf32>
    %146 = vector.extract_strided_slice %27 {offsets = [2, 0], sizes = [1, 128], strides = [1, 1]} : vector<4x128xf32> to vector<1x128xf32>
    %147 = arith.mulf %143, %146 : vector<1x128xf32>
    %148 = arith.addf %141, %147 : vector<1x128xf32>
    %149 = arith.select %145, %141, %148 : vector<1x128xi1>, vector<1x128xf32>
    %c32_81 = arith.constant 32 : index
    %c2_82 = arith.constant 2 : index
    %150 = vector.load %arg1[%c32_81, %c2_82] : memref<176x128xf32, #tpu.memory_space<vmem>>, vector<32x1xf32>
    %151 = vector.broadcast %150 : vector<32x1xf32> to vector<32x128xf32>
    %152 = vector.broadcast %149 : vector<1x128xf32> to vector<32x128xf32>
    %153 = arith.mulf %151, %152 : vector<32x128xf32>
    %154 = arith.addf %112, %153 : vector<32x128xf32>
    %c3_83 = arith.constant 3 : index
    %c0_84 = arith.constant 0 : index
    %c0_85 = arith.constant 0 : index
    %155 = vector.load %arg5[%c3_83, %c0_84, %c0_85] : memref<4x32x128xf32, #tpu.memory_space<vmem>>, vector<1x32x128xf32>
    %156 = vector.shape_cast %155 : vector<1x32x128xf32> to vector<32x128xf32>
    %157 = arith.addf %156, %154 : vector<32x128xf32>
    %cst_86 = arith.constant 0.000000e+00 : f32
    %158 = vector.broadcast %cst_86 : f32 to vector<32x128xf32>
    %159 = arith.cmpf oge, %157, %158 : vector<32x128xf32>
    %cst_87 = arith.constant 0.00999999977 : f32
    %160 = vector.broadcast %cst_87 : f32 to vector<32x128xf32>
    %161 = arith.mulf %160, %157 : vector<32x128xf32>
    %162 = arith.select %159, %157, %161 : vector<32x128xi1>, vector<32x128xf32>
    %c96_88 = arith.constant 96 : index
    %c0_89 = arith.constant 0 : index
    %163 = vector.load %arg1[%c96_88, %c0_89] : memref<176x128xf32, #tpu.memory_space<vmem>>, vector<32x32xf32>
    %cst_90 = arith.constant dense<0.000000e+00> : vector<32x128xf32>
    %164 = tpu.matmul %163, %162, %cst_90 {dimension_numbers = #tpu.dot_dimension_numbers<[1], [0], [0], [1], [0, 0, 1, 1], [], []>} : vector<32x32xf32>, vector<32x128xf32>, vector<32x128xf32> -> vector<32x128xf32>
    %c128_91 = arith.constant 128 : index
    %c0_92 = arith.constant 0 : index
    %165 = vector.load %arg1[%c128_91, %c0_92] : memref<176x128xf32, #tpu.memory_space<vmem>>, vector<32x1xf32>
    %166 = vector.broadcast %165 : vector<32x1xf32> to vector<32x128xf32>
    %167 = arith.addf %164, %166 : vector<32x128xf32>
    %cst_93 = arith.constant 0.000000e+00 : f32
    %168 = vector.broadcast %cst_93 : f32 to vector<32x128xf32>
    %169 = arith.cmpf oge, %167, %168 : vector<32x128xf32>
    %cst_94 = arith.constant 0.00999999977 : f32
    %170 = vector.broadcast %cst_94 : f32 to vector<32x128xf32>
    %171 = arith.mulf %170, %167 : vector<32x128xf32>
    %172 = arith.select %169, %167, %171 : vector<32x128xi1>, vector<32x128xf32>
    %c160_95 = arith.constant 160 : index
    %c0_96 = arith.constant 0 : index
    %173 = vector.load %arg1[%c160_95, %c0_96] : memref<176x128xf32, #tpu.memory_space<vmem>>, vector<2x32xf32>
    %cst_97 = arith.constant dense<0.000000e+00> : vector<2x128xf32>
    %174 = tpu.matmul %173, %172, %cst_97 {dimension_numbers = #tpu.dot_dimension_numbers<[1], [0], [0], [1], [0, 0, 1, 1], [], []>} : vector<2x32xf32>, vector<32x128xf32>, vector<2x128xf32> -> vector<2x128xf32>
    %c168_98 = arith.constant 168 : index
    %c0_99 = arith.constant 0 : index
    %175 = vector.load %arg1[%c168_98, %c0_99] : memref<176x128xf32, #tpu.memory_space<vmem>>, vector<2x1xf32>
    %176 = vector.broadcast %175 : vector<2x1xf32> to vector<2x128xf32>
    %177 = arith.addf %174, %176 : vector<2x128xf32>
    %cst_100 = arith.constant 0.000000e+00 : f32
    %178 = vector.broadcast %cst_100 : f32 to vector<2x128xf32>
    %179 = arith.cmpf oge, %177, %178 : vector<2x128xf32>
    %cst_101 = arith.constant 0.00999999977 : f32
    %180 = vector.broadcast %cst_101 : f32 to vector<2x128xf32>
    %181 = arith.mulf %180, %177 : vector<2x128xf32>
    %182 = arith.select %179, %177, %181 : vector<2x128xi1>, vector<2x128xf32>
    %183 = vector.extract_strided_slice %182 {offsets = [0, 0], sizes = [1, 128], strides = [1, 1]} : vector<2x128xf32> to vector<1x128xf32>
    %184 = vector.extract_strided_slice %182 {offsets = [1, 0], sizes = [1, 128], strides = [1, 1]} : vector<2x128xf32> to vector<1x128xf32>
    %185 = math.exp %184 : vector<1x128xf32>
    %cst_102 = arith.constant 0.000000e+00 : f32
    %186 = vector.broadcast %cst_102 : f32 to vector<1x128xf32>
    %187 = arith.cmpf oeq, %185, %186 : vector<1x128xf32>
    %188 = vector.extract_strided_slice %27 {offsets = [3, 0], sizes = [1, 128], strides = [1, 1]} : vector<4x128xf32> to vector<1x128xf32>
    %189 = arith.mulf %185, %188 : vector<1x128xf32>
    %190 = arith.addf %183, %189 : vector<1x128xf32>
    %191 = arith.select %187, %183, %190 : vector<1x128xi1>, vector<1x128xf32>
    %cst_103 = arith.constant 0.000000e+00 : f32
    %192 = vector.broadcast %cst_103 : f32 to vector<1x128xf32>
    %193 = tpu.concatenate %65, %107, %149, %191, %192, %192, %192, %192 in 0 : vector<1x128xf32>, vector<1x128xf32>, vector<1x128xf32>, vector<1x128xf32>, vector<1x128xf32>, vector<1x128xf32>, vector<1x128xf32>, vector<1x128xf32> -> vector<8x128xf32>
    %194 = tpu.transpose %193, [1, 0] : vector<8x128xf32> -> vector<128x8xf32>
    %195 = vector.extract_strided_slice %194 {offsets = [0, 0], sizes = [128, 4], strides = [1, 1]} : vector<128x8xf32> to vector<128x4xf32>
    %c0_104 = arith.constant 0 : index
    %c0_105 = arith.constant 0 : index
    %196 = vector.load %arg4[%c0_104, %c0_105] : memref<128x4xf32, #tpu.memory_space<vmem>>, vector<128x4xf32>
    tpu.vector_store %arg4[%c0_104, %c0_105], %195 {strides = array<i32>} : memref<128x4xf32, #tpu.memory_space<vmem>>, vector<128x4xf32>,
    return
  }
  func.func @transform_0(%arg0: i32) -> (i32, i32) {
    %c0_i32 = arith.constant 0 : i32
    %c0_i32_0 = arith.constant 0 : i32
    %c0_i32_1 = arith.constant 0 : i32
    return %c0_i32, %c0_i32_0 : i32, i32
  }
  func.func @transform_1(%arg0: i32) -> (i32, i32) {
    %c0_i32 = arith.constant 0 : i32
    %c0_i32_0 = arith.constant 0 : i32
    return %arg0, %c0_i32 : i32, i32
  }
  func.func @transform_2(%arg0: i32) -> (i32, i32) {
    %c0_i32 = arith.constant 0 : i32
    %c0_i32_0 = arith.constant 0 : i32
    return %c0_i32, %arg0 : i32, i32
  }
  func.func @transform_3(%arg0: i32) -> (i32, i32) {
    %c0_i32 = arith.constant 0 : i32
    %c0_i32_0 = arith.constant 0 : i32
    return %arg0, %c0_i32 : i32, i32
  }
}

</mosaic_0001>

<bundles_post_ra>
// kernel: tpu_custom_call.1
= control target key start
LH: loop header
LB: loop body
LE: loop exit
PB: predicated region body
PF: predicated region fallthrough
CT: control target
= control target key end

     0   :  { %8 = vsyncpa [#allocation4], 0  ;;  %s1672_s12 = smov [#allocation3]   ;;  %s2060_s0 = inlined_call_operand.hbm [shape: f32[176,128], index: 0, kind: input, shape index: {}]   ;;  %s2061_s1 = inlined_call_operand.vmem [shape: f32[128,16], index: 1, kind: input, shape index: {}]   ;;  %s2062_s2 = inlined_call_operand.vmem [shape: f32[4,128], index: 2, kind: input, shape index: {}]   ;;  %s2063_s3 = inlined_call_operand.vmem [shape: f32[128,4], index: 3, kind: output, shape index: {}]  }
   0x1   :  { %s14_s13 = sshll.u32 %s1672_s12, 4  ;;  %s15_s13 = int_to_ptr.vmem [resolvable:$true] %s14_s13 }
   0x2   :  { %s1658_s14 = scalar_lea.vmem %s15_s13, 2816  ;;  %p1663_p1 = scmp.lt.s32.totalorder %s15_s13, %s15_s13 }
   0x3   :  { %p1659_p0 = scmp.ne.s32.totalorder %s15_s13, %s1658_s14  ;;  %p1664_p2 = scmp.lt.s32.totalorder %s1658_s14, %s1658_s14 }
   0x5   :  { %p1665_p3 = por %p1664_p2, %p1663_p1 }
   0x7   :  { %p1666_p4 = pnand %p1665_p3, %p1659_p0 }
   0x9   :  { %1669 = shalt.err (!%p1666_p4)
}
   0xa   :  { %s1673_s15 = smov 128   ;;  %s1674_s16 = smov 8  }
   0xb   :  { %20 = dma.hbm_to_vmem [thread:$0]  %s2060_s0, 2816, %s15_s13, [#allocation4], %s1673_s15, %s1673_s15, %s1674_s16  }
   0xc   :  { %1670 = dma.done.wait [#allocation4], 2816  }
   0xd   :  { %1671 = vsyncadd [#allocation4], 4294964480  ;;  %v1675_v0 = vmov 0   ;;  %vm48_vm0 = vcmask 130048   ;;  %v47_v1 = vld [vmem:[%s2061_s1 + $0x78] sm:$0xff]  ;;  %v46_v2 = vld [vmem:[%s2061_s1 + $0x70] sm:$0xff] }
   0xe   :  { %1633 = vset.pattern.permute.xlu1 %v1675_v0  ;;  %1632 = vset.pattern.permute.xlu0 %v1675_v0  ;;  %v45_v3 = vld [vmem:[%s2061_s1 + $0x68] sm:$0xff]  ;;  %v28_v5 = vld [vmem:[#allocation3] sm:$0xff]  ;;  %v1727_v8 = vld [vmem:[#allocation3 + $0x58] sm:$0xff]  ;;  %v1676_v17 = vmov 1   ;;  %v1677_v29 = vmov 2   ;;  %v1678_v36 = vmov 3  }
   0xf   :  { %1485 = vmatprep.subr.msk.mxu0 %vm48_vm0, %v47_v1  ;;  %v1716_v4 = vld [vmem:[#allocation3 + $0x48] sm:$0xff]  ;;  %1517 = vmatprep.mubr.msk.f32.mxu0 %vm48_vm0, %v28_v5  ;;  %v1722_v6 = vld [vmem:[#allocation3 + $0x40] sm:$0xff]  ;;  %v352_v9 = vld [vmem:[#allocation3 + $0x90] sm:$0xff]  ;;  %vm374_vm1 = vcmask 261120   ;;  %v1679_v61 = vmov 0.0   ;;  %vm1680_vm6 = vmmov 0  }
  0x10   :  { %1486 = vmatpush3.xpose.msk.msra.mxu0 %vm48_vm0, %v47_v1  ;;  %205 = vperm.xlu1 %1633, %v1716_v4   ;;  %v44_v7 = vld [vmem:[%s2061_s1 + $0x60] sm:$0xff]  ;;  %v43_v10 = vld [vmem:[%s2061_s1 + $0x58] sm:$0xff]  ;;  %v1736_v11 = vld [vmem:[#allocation3 + $0x50] sm:$0xff] }
  0x11   :  { %1487 = vmatprep.subr.msk.mxu0 %vm48_vm0, %v46_v2  ;;  %215 = vperm.xlu0 %1632, %v1727_v8   ;;  %v353_v12 = vld [vmem:[#allocation3 + $0x98] sm:$0xff]  ;;  %v350_v13 = vld [vmem:[#allocation3 + $0x80] sm:$0xff]  ;;  %v42_v14 = vld [vmem:[%s2061_s1 + $0x50] sm:$0xff] }
  0x12   :  { %v351_v15 = vld [vmem:[#allocation3 + $0x88] sm:$0xff]  ;;  %v40_v19 = vld [vmem:[%s2061_s1 + $0x40] sm:$0xff]  ;;  %v39_v20 = vld [vmem:[%s2061_s1 + $0x38] sm:$0xff] }
  0x13   :  { %v41_v16 = vld [vmem:[%s2061_s1 + $0x48] sm:$0xff]  ;;  %v588_v21 = vld [vmem:[#allocation3 + $0x38] sm:$0xff]  ;;  %v38_v22 = vld [vmem:[%s2061_s1 + $0x30] sm:$0xff] }
  0x14   :  { %1488 = vmatpush3.xpose.msk.msra.mxu0 %vm48_vm0, %v46_v2  ;;  %200 = vperm.xlu1 %1633, %v1722_v6   ;;  %v485_v18 = vld [vmem:[#allocation3 + $0xa8] sm:$0x3]  ;;  %v587_v23 = vld [vmem:[#allocation3 + $0x30] sm:$0xff]  ;;  %v36_v26 = vld [vmem:[%s2061_s1 + $0x20] sm:$0xff] }
  0x15   :  { %1489 = vmatprep.subr.msk.mxu0 %vm48_vm0, %v45_v3  ;;  %210 = vperm.xlu0 %1632, %v1736_v11   ;;  %v586_v24 = vld [vmem:[#allocation3 + $0x28] sm:$0xff]  ;;  %v585_v27 = vld [vmem:[#allocation3 + $0x20] sm:$0xff]  ;;  %v35_v28 = vld [vmem:[%s2061_s1 + $0x18] sm:$0xff] }
  0x16   :  { %v37_v25 = vld [vmem:[%s2061_s1 + $0x28] sm:$0xff]  ;;  %v34_v30 = vld [vmem:[%s2061_s1 + $0x10] sm:$0xff]  ;;  %v32_v32 = vld [vmem:[%s2061_s1] sm:$0xff] }
  0x17   :  { %v33_v31 = vld [vmem:[%s2061_s1 + $0x8] sm:$0xff]  ;;  %v30_v34 = vld [vmem:[#allocation3 + $0x10] sm:$0xff]  ;;  %v31_v35 = vld [vmem:[#allocation3 + $0x18] sm:$0xff] }
  0x18   :  { %1490 = vmatpush3.xpose.msk.msra.mxu0 %vm48_vm0, %v45_v3  ;;  %366 = vperm.xlu1 %1633, %v352_v9   ;;  %v29_v33 = vld [vmem:[#allocation3 + $0x8] sm:$0xff]  ;;  %v1812_v37 = vld [vmem:[#allocation3 + $0x60] sm:$0xff]  ;;  %v1830_v59 = vld [vmem:[#allocation3 + $0x70] sm:$0xff] }
  0x19   :  { %1491 = vmatprep.subr.msk.mxu0 %vm48_vm0, %v44_v7  ;;  %371 = vperm.xlu0 %1632, %v353_v12   ;;  %v1828_v58 = vld [vmem:[#allocation3 + $0x68] sm:$0xff]  ;;  %v1836_v60 = vld [vmem:[#allocation3 + $0x78] sm:$0xff] }
  0x1a   :  { %1531 = vmatprep.mubr.msk.f32.mxu1 %vm374_vm1, %v1812_v37 }
  0x1c   :  { %1492 = vmatpush3.xpose.msk.msra.mxu0 %vm48_vm0, %v44_v7  ;;  %356 = vperm.xlu1 %1633, %v350_v13  }
  0x1d   :  { %1493 = vmatprep.subr.msk.mxu0 %vm48_vm0, %v43_v10  ;;  %361 = vperm.xlu0 %1632, %v351_v15  }
  0x20   :  { %1494 = vmatpush3.xpose.msk.msra.mxu0 %vm48_vm0, %v43_v10  ;;  %1634 = vset.pattern.permute.xlu1 %v1676_v17 }
  0x21   :  { %1495 = vmatprep.subr.msk.mxu0 %vm48_vm0, %v42_v14  ;;  %247 = vperm.xlu1 %1634, %v1727_v8  }
  0x22   :  { %488 = vperm.xlu0 %1632, %v485_v18  }
  0x24   :  { %1496 = vmatpush3.xpose.msk.msra.mxu0 %vm48_vm0, %v42_v14 }
  0x25   :  { %1497 = vmatprep.subr.msk.mxu0 %vm48_vm0, %v41_v16  ;;  %242 = vperm.xlu1 %1634, %v1736_v11  }
  0x26   :  { %606 = vperm.xlu0 %1632, %v588_v21  }
  0x28   :  { %1498 = vmatpush3.xpose.msk.msra.mxu0 %vm48_vm0, %v41_v16 }
  0x29   :  { %1499 = vmatprep.subr.msk.mxu0 %vm48_vm0, %v40_v19  ;;  %237 = vperm.xlu1 %1634, %v1716_v4  }
  0x2a   :  { %601 = vperm.xlu0 %1632, %v587_v23  }
  0x2c   :  { %1500 = vmatpush3.xpose.msk.msra.mxu0 %vm48_vm0, %v40_v19 }
  0x2d   :  { %1501 = vmatprep.subr.msk.mxu0 %vm48_vm0, %v39_v20  ;;  %232 = vperm.xlu1 %1634, %v1722_v6  }
  0x2e   :  { %596 = vperm.xlu0 %1632, %v586_v24  }
  0x30   :  { %1502 = vmatpush3.xpose.msk.msra.mxu0 %vm48_vm0, %v39_v20 }
  0x31   :  { %1503 = vmatprep.subr.msk.mxu0 %vm48_vm0, %v38_v22  ;;  %839 = vperm.xlu1 %1634, %v588_v21  }
  0x32   :  { %591 = vperm.xlu0 %1632, %v585_v27  }
  0x34   :  { %1504 = vmatpush3.xpose.msk.msra.mxu0 %vm48_vm0, %v38_v22 }
  0x35   :  { %1505 = vmatprep.subr.msk.mxu0 %vm48_vm0, %v37_v25  ;;  %835 = vperm.xlu1 %1634, %v587_v23  }
  0x36   :  { %1635 = vset.pattern.permute.xlu0 %v1677_v29 }
  0x37   :  { %280 = vperm.xlu0 %1635, %v1727_v8  }
  0x38   :  { %1506 = vmatpush3.xpose.msk.msra.mxu0 %vm48_vm0, %v37_v25 }
  0x39   :  { %1507 = vmatprep.subr.msk.mxu0 %vm48_vm0, %v36_v26  ;;  %1636 = vset.pattern.permute.xlu1 %v1677_v29 }
  0x3a   :  { %275 = vperm.xlu1 %1636, %v1736_v11  }
  0x3b   :  { %1637 = vset.pattern.permute.xlu0 %v1676_v17 }
  0x3c   :  { %1508 = vmatpush3.xpose.msk.msra.mxu0 %vm48_vm0, %v36_v26  ;;  %831 = vperm.xlu0 %1637, %v586_v24  }
  0x3d   :  { %1509 = vmatprep.subr.msk.mxu0 %vm48_vm0, %v35_v28 }
  0x3e   :  { %270 = vperm.xlu1 %1636, %v1716_v4  }
  0x40   :  { %1510 = vmatpush3.xpose.msk.msra.mxu0 %vm48_vm0, %v35_v28  ;;  %1639 = vset.pattern.permute.xlu0 %v1677_v29 }
  0x41   :  { %1511 = vmatprep.subr.msk.mxu0 %vm48_vm0, %v34_v30  ;;  %265 = vperm.xlu0 %1639, %v1722_v6  }
  0x42   :  { %1638 = vset.pattern.permute.xlu1 %v1676_v17  ;;  %v1857_v17 = vld [vmem:[#allocation3 + $0xa0] sm:$0x3] }
  0x43   :  { %827 = vperm.xlu1 %1638, %v585_v27  }
  0x44   :  { %1512 = vmatpush3.xpose.msk.msra.mxu0 %vm48_vm0, %v34_v30  ;;  %v609_v30 = vlaneseq }
  0x45   :  { %1513 = vmatprep.subr.msk.mxu0 %vm48_vm0, %v33_v31  ;;  %1070 = vperm.xlu0 %1639, %v587_v23  }
  0x47   :  { %1640 = vset.pattern.permute.xlu1 %v1677_v29 }
  0x48   :  { %1514 = vmatpush3.xpose.msk.msra.mxu0 %vm48_vm0, %v33_v31  ;;  %1074 = vperm.xlu1 %1640, %v588_v21  }
  0x49   :  { %1515 = vmatprep.subr.msk.mxu0 %vm48_vm0, %v32_v32  ;;  %1066 = vperm.xlu0 %1639, %v586_v24  }
  0x4c   :  { %1516 = vmatpush3.xpose.msk.msra.mxu0 %vm48_vm0, %v32_v32  ;;  %1641 = vset.pattern.permute.xlu1 %v1678_v36 }
  0x4d   :  { %313 = vperm.xlu1 %1641, %v1727_v8   ;;  %1062 = vperm.xlu0 %1639, %v585_v27   ;;  %v1870_v27 = vld [vmem:[%s2062_s2] sm:$0xf] }
  0x4e   :  { %v571_v29 = vrot.slane %v1870_v27, 7 }
  0x4f   :  { %1518 = vmatmul.mubr.msk.f32.vlgmr.msra.gmra.mxu0 %vm48_vm0, %v29_v33 }
  0x50   :  { %1520 = vmatprep.mubr.msk.f32.mxu0 %vm48_vm0, %v30_v34 }
  0x51   :  { %308 = vperm.xlu1 %1641, %v1736_v11  }
  0x53   :  { %1521 = vmatmul.mubr.msk.f32.gmra.mxu0 %vm48_vm0, %v31_v35  ;;  %v610_v35 = vshrl.u32 %v609_v30, 7 }
  0x55   :  { %303 = vperm.xlu1 %1641, %v1716_v4  }
  0x59   :  { %298 = vperm.xlu1 %1641, %v1722_v6  }
  0x8b   :  { %v206_v40 = vpop.permute.xlu1 %205 }
  0x8c   :  { %v216_v38 = vpop.permute.xlu0 %215 }
  0x8f   :  { %v201_v47 = vpop.permute.xlu1 %200 }
  0x90   :  { %v211_v44 = vpop.permute.xlu0 %210 }
  0x93   :  { %v1845_v63 = vpop.permute.xlu1 %366 }
  0x94   :  { %v1843_v62 = vpop.permute.xlu0 %371 }
  0x97   :  { %v1851_v6 = vpop.permute.xlu1 %356 }
  0x98   :  { %v1847_v2 = vpop.permute.xlu0 %361 }
  0x9c   :  { %v248_v28 = vpop.permute.xlu1 %247 }
  0x9d   :  { %v1864_v19 = vpop.permute.xlu0 %488 }
  0xa0   :  { %v243_v33 = vpop.permute.xlu1 %242 }
  0xa1   :  { %v607_v26 = vpop.permute.xlu0 %606 }
  0xa5   :  { %v602_v31 = vpop.permute.xlu0 %601 }
 0x10f   :  { %v1816_v39 = vpop.f32.mrf.mxu0 }
 0x110   :  { %v219_v45 = vadd.f32 %v1816_v39, %v206_v40 }
 0x111   :  { %v1818_v41 = vpop.f32.mrf.mxu0 }
 0x112   :  { %v218_v49 = vadd.f32 %v201_v47, %v1818_v41  ;;  %v339_v53 = vmul.f32 0.01, %v219_v45  ;;  %vm335_vm4 = vcmp.ge.f32.partialorder %v219_v45, 0.0 }
 0x113   :  { %v1820_v42 = vpop.f32.mrf.mxu0 }
 0x114   :  { %v221_v43 = vadd.f32 %v1820_v42, %v216_v38  ;;  %v338_v55 = vmul.f32 0.01, %v218_v49  ;;  %vm334_vm5 = vcmp.ge.f32.partialorder %v218_v49, 0.0  ;;  %v343_v56 = vsel %vm335_vm4, %v219_v45, %v339_v53  ;;  %v597_v38 = vpop.permute.xlu0 %596 }
 0x115   :  { %v1824_v46 = vpop.f32.mrf.mxu0 }
 0x116   :  { %v220_v48 = vadd.f32 %v211_v44, %v1824_v46  ;;  %vm337_vm2 = vcmp.ge.f32.partialorder %v221_v43, 0.0  ;;  %v341_v50 = vmul.f32 0.01, %v221_v43  ;;  %v342_v57 = vsel %vm334_vm5, %v218_v49, %v338_v55  ;;  %v238_v44 = vpop.permute.xlu1 %237 }
 0x117   :  { %v252_v53 = vadd.f32 %v243_v33, %v1824_v46 }
 0x118   :  { %vm336_vm3 = vcmp.ge.f32.partialorder %v220_v48, 0.0  ;;  %v340_v51 = vmul.f32 0.01, %v220_v48  ;;  %v345_v52 = vsel %vm337_vm2, %v221_v43, %v341_v50  ;;  %v1873_v43 = vsub.s32 1, %v610_v35  ;;  %v592_v50 = vpop.permute.xlu0 %591 }
 0x119   :  { %1523 = vmatprep.subr.mxu1 %v345_v52 }
 0x11a   :  { %v344_v54 = vsel %vm336_vm3, %v220_v48, %v340_v51  ;;  %1524 = vmatpush3.msra.mxu1 %v345_v52  ;;  %v251_v51 = vadd.f32 %v1816_v39, %v238_v44  ;;  %v253_v52 = vadd.f32 %v1820_v42, %v248_v28 }
 0x11b   :  { %1525 = vmatprep.subr.mxu1 %v344_v54 }
 0x11c   :  { %1526 = vmatpush3.msra.mxu1 %v344_v54 }
 0x11d   :  { %1527 = vmatprep.subr.mxu1 %v343_v56 }
 0x11e   :  { %1528 = vmatpush3.msra.mxu1 %v343_v56 }
 0x11f   :  { %1529 = vmatprep.subr.mxu1 %v342_v57 }
 0x120   :  { %1530 = vmatpush3.msra.mxu1 %v342_v57 }
 0x121   :  { %1532 = vmatmul.mubr.msk.f32.vlgmr.msra.gmra.mxu1 %vm374_vm1, %v1828_v58  ;;  %1537 = vmatprep.subr.mxu1 %v1679_v61 }
 0x122   :  { %1534 = vmatprep.mubr.msk.f32.mxu1 %vm374_vm1, %v1830_v59 }
 0x125   :  { %1535 = vmatmul.mubr.msk.f32.gmra.mxu1 %vm374_vm1, %v1836_v60 }
 0x126   :  { %1545 = vmatprep.mubr.msk.f32.mxu1 %vm1680_vm6, %v1679_v61 }
 0x1e1   :  { %v1533_v0 = vpop.f32.mrf.mxu1 }
 0x1e2   :  { %v459_v4 = vadd.f32 %v1533_v0, %v1847_v2  ;;  %v233_v0 = vpop.permute.xlu1 %232 }
 0x1e3   :  { %v453_v1 = vpop.f32.mrf.mxu1 }
 0x1e4   :  { %v454_v8 = vadd.f32 %v453_v1, %v1851_v6  ;;  %v477_v11 = vmul.f32 0.01, %v459_v4  ;;  %vm473_vm9 = vcmp.ge.f32.partialorder %v459_v4, 0.0  ;;  %v250_v1 = vadd.f32 %v233_v0, %v1818_v41 }
 0x1e5   :  { %v1536_v3 = vpop.f32.mrf.mxu1 }
 0x1e6   :  { %v469_v5 = vadd.f32 %v1536_v3, %v1843_v62  ;;  %v476_v14 = vmul.f32 0.01, %v454_v8  ;;  %vm472_vm10 = vcmp.ge.f32.partialorder %v454_v8, 0.0  ;;  %v481_v16 = vsel %vm473_vm9, %v459_v4, %v477_v11 }
 0x1e7   :  { %v463_v7 = vpop.f32.mrf.mxu1 }
 0x1e8   :  { %vm475_vm7 = vcmp.ge.f32.partialorder %v469_v5, 0.0  ;;  %v479_v9 = vmul.f32 0.01, %v469_v5  ;;  %v464_v10 = vadd.f32 %v463_v7, %v1845_v63  ;;  %v480_v18 = vsel %vm472_vm10, %v454_v8, %v476_v14 }
 0x1ea   :  { %vm474_vm8 = vcmp.ge.f32.partialorder %v464_v10, 0.0  ;;  %v478_v12 = vmul.f32 0.01, %v464_v10  ;;  %v483_v13 = vsel %vm475_vm7, %v469_v5, %v479_v9 }
 0x1eb   :  { %1538 = vmatpush3.msra.mxu1 %v483_v13 }
 0x1ec   :  { %1539 = vmatprep.subr.mxu1 %v1679_v61  ;;  %v482_v15 = vsel %vm474_vm8, %v464_v10, %v478_v12  ;;  %vm1305_vm8 = vcmask 1040384  }
 0x1ed   :  { %1540 = vmatpush3.msra.mxu1 %v482_v15 }
 0x1ee   :  { %1541 = vmatprep.subr.mxu1 %v1679_v61 }
 0x1ef   :  { %1542 = vmatpush3.msra.mxu1 %v481_v16 }
 0x1f0   :  { %1543 = vmatprep.subr.mxu1 %v1679_v61 }
 0x1f1   :  { %1544 = vmatpush3.msra.mxu1 %v480_v18 }
 0x1f2   :  { %1546 = vmatmul.mubr.msk.f32.vlgmr.msra.gmra.mxu1 %vm374_vm1, %v1857_v17 }
 0x1f3   :  { %1556 = vmatprep.mubr.msk.f32.mxu1 %vm374_vm1, %v1812_v37 }
 0x2b2   :  { %v560_v20 = vpop.f32.mrf.mxu1 }
 0x2b3   :  { %v561_v21 = vadd.f32 %v560_v20, %v1864_v19 }
 0x2b4   :  { %v1547_v22 = vpop.f32.mrf.mxu1 }
 0x2b5   :  { %vm564_vm11 = vcmp.ge.f32.partialorder %v561_v21, 0.0  ;;  %v565_v23 = vmul.f32 0.01, %v561_v21 }
 0x2b7   :  { %v566_v24 = vsel %vm564_vm11, %v561_v21, %v565_v23 }
 0x2b8   :  { %v567_v25 = vmul.f32 1.442695, %v566_v24  ;;  %v579_v45 = vrot.slane %v566_v24, 7 }
 0x2ba   :  { %1642 = vpow2.f32 %v567_v25 }
 0x2c7   :  { %v1643_v32 = vpop.eup %1642 }
 0x2c8   :  { %v573_v34 = vmul.f32 %v1643_v32, %v571_v29  ;;  %vm569_vm12 = vcmp.eq.f32.partialorder %v1643_v32, 0.0 }
 0x2ca   :  { %v575_v36 = vrot.slane %v573_v34, 1 }
 0x2cc   :  { %v577_v40 = vadd.f32 %v575_v36, %v566_v24 }
 0x2ce   :  { %v582_v47 = vrot.slane %v577_v40, 7 }
 0x2d0   :  { %v1875_v48 = vsel %vm569_vm12, %v579_v45, %v582_v47  ;;  %v840_v47 = vpop.permute.xlu1 %839 }
 0x2d1   :  { %v612_v49 = vrot.slane %v1875_v48, %v1873_v43 }
 0x2d3   :  { %v1882_v54 = vmul.f32 %v612_v49, %v607_v26  ;;  %v1884_v55 = vmul.f32 %v612_v49, %v602_v31  ;;  %v1886_v56 = vmul.f32 %v612_v49, %v597_v38  ;;  %v1888_v57 = vmul.f32 %v612_v49, %v592_v50 }
 0x2d4   :  { %v836_v49 = vpop.permute.xlu1 %835 }
 0x2d5   :  { %v628_v3 = vadd.f32 %v1882_v54, %v253_v52  ;;  %v627_v4 = vadd.f32 %v1884_v55, %v252_v53  ;;  %v626_v5 = vadd.f32 %v1886_v56, %v251_v51  ;;  %v625_v9 = vadd.f32 %v1888_v57, %v250_v1  ;;  %v281_v52 = vpop.permute.xlu0 %280 }
 0x2d7   :  { %vm632_vm13 = vcmp.ge.f32.partialorder %v628_v3, 0.0  ;;  %v636_v7 = vmul.f32 0.01, %v628_v3  ;;  %v635_v8 = vmul.f32 0.01, %v627_v4  ;;  %vm631_vm14 = vcmp.ge.f32.partialorder %v627_v4, 0.0 }
 0x2d8   :  { %v634_v11 = vmul.f32 0.01, %v626_v5  ;;  %vm630_vm15 = vcmp.ge.f32.partialorder %v626_v5, 0.0  ;;  %v633_v13 = vmul.f32 0.01, %v625_v9  ;;  %vm629_vm0 = vcmp.ge.f32.partialorder %v625_v9, 0.0  ;;  %v276_v50 = vpop.permute.xlu1 %275 }
 0x2d9   :  { %v640_v10 = vsel %vm632_vm13, %v628_v3, %v636_v7  ;;  %v639_v12 = vsel %vm631_vm14, %v627_v4, %v635_v8  ;;  %v832_v4 = vpop.permute.xlu0 %831  ;;  %v1297_v8 = vrot.slane %v1875_v48, 1 }
 0x2da   :  { %1548 = vmatprep.subr.mxu1 %v640_v10  ;;  %v638_v14 = vsel %vm630_vm15, %v626_v5, %v634_v11  ;;  %v637_v15 = vsel %vm629_vm0, %v625_v9, %v633_v13 }
 0x2db   :  { %1549 = vmatpush3.msra.mxu1 %v640_v10 }
 0x2dc   :  { %1550 = vmatprep.subr.mxu1 %v639_v12  ;;  %v271_v1 = vpop.permute.xlu1 %270 }
 0x2dd   :  { %1551 = vmatpush3.msra.mxu1 %v639_v12 }
 0x2de   :  { %1552 = vmatprep.subr.mxu1 %v638_v14 }
 0x2df   :  { %1553 = vmatpush3.msra.mxu1 %v638_v14 }
 0x2e0   :  { %1554 = vmatprep.subr.mxu1 %v637_v15  ;;  %v828_v12 = vpop.permute.xlu1 %827 }
 0x2e1   :  { %1555 = vmatpush3.msra.mxu1 %v637_v15 }
 0x2e2   :  { %1557 = vmatmul.mubr.msk.f32.vlgmr.msra.gmra.mxu1 %vm374_vm1, %v1828_v58  ;;  %1562 = vmatprep.subr.mxu1 %v1679_v61 }
 0x2e3   :  { %1559 = vmatprep.mubr.msk.f32.mxu1 %vm374_vm1, %v1830_v59 }
 0x2e6   :  { %1560 = vmatmul.mubr.msk.f32.gmra.mxu1 %vm374_vm1, %v1836_v60 }
 0x2e7   :  { %1570 = vmatprep.mubr.msk.f32.mxu1 %vm1680_vm6, %v1679_v61 }
 0x3a2   :  { %v1558_v16 = vpop.f32.mrf.mxu1 }
 0x3a3   :  { %v713_v21 = vadd.f32 %v1558_v16, %v1847_v2 }
 0x3a4   :  { %v707_v18 = vpop.f32.mrf.mxu1 }
 0x3a5   :  { %v708_v24 = vadd.f32 %v707_v18, %v1851_v6  ;;  %v731_v28 = vmul.f32 0.01, %v713_v21  ;;  %vm727_vm4 = vcmp.ge.f32.partialorder %v713_v21, 0.0  ;;  %v284_v18 = vadd.f32 %v1816_v39, %v271_v1 }
 0x3a6   :  { %v1561_v20 = vpop.f32.mrf.mxu1 }
 0x3a7   :  { %v723_v22 = vadd.f32 %v1561_v20, %v1843_v62  ;;  %v730_v31 = vmul.f32 0.01, %v708_v24  ;;  %vm726_vm5 = vcmp.ge.f32.partialorder %v708_v24, 0.0  ;;  %v735_v33 = vsel %vm727_vm4, %v713_v21, %v731_v28  ;;  %v266_v20 = vpop.permute.xlu0 %265 }
 0x3a8   :  { %v717_v23 = vpop.f32.mrf.mxu1  ;;  %v286_v21 = vadd.f32 %v1820_v42, %v281_v52 }
 0x3a9   :  { %vm729_vm2 = vcmp.ge.f32.partialorder %v723_v22, 0.0  ;;  %v733_v25 = vmul.f32 0.01, %v723_v22  ;;  %v718_v26 = vadd.f32 %v717_v23, %v1845_v63  ;;  %v734_v34 = vsel %vm726_vm5, %v708_v24, %v730_v31 }
 0x3aa   :  { %vm1307_vm5 = vcmask 1041408  }
 0x3ab   :  { %vm728_vm3 = vcmp.ge.f32.partialorder %v718_v26, 0.0  ;;  %v732_v29 = vmul.f32 0.01, %v718_v26  ;;  %v737_v30 = vsel %vm729_vm2, %v723_v22, %v733_v25  ;;  %v285_v22 = vadd.f32 %v276_v50, %v1824_v46 }
 0x3ac   :  { %1563 = vmatpush3.msra.mxu1 %v737_v30 }
 0x3ad   :  { %1564 = vmatprep.subr.mxu1 %v1679_v61  ;;  %v736_v32 = vsel %vm728_vm3, %v718_v26, %v732_v29  ;;  %v283_v26 = vadd.f32 %v266_v20, %v1818_v41 }
 0x3ae   :  { %1565 = vmatpush3.msra.mxu1 %v736_v32 }
 0x3af   :  { %1566 = vmatprep.subr.mxu1 %v1679_v61 }
 0x3b0   :  { %1567 = vmatpush3.msra.mxu1 %v735_v33 }
 0x3b1   :  { %1568 = vmatprep.subr.mxu1 %v1679_v61 }
 0x3b2   :  { %1569 = vmatpush3.msra.mxu1 %v734_v34 }
 0x3b3   :  { %1571 = vmatmul.mubr.msk.f32.vlgmr.msra.gmra.mxu1 %vm374_vm1, %v1857_v17 }
 0x3b4   :  { %1581 = vmatprep.mubr.msk.f32.mxu1 %vm374_vm1, %v1812_v37 }
 0x473   :  { %v804_v35 = vpop.f32.mrf.mxu1 }
 0x474   :  { %v805_v36 = vadd.f32 %v804_v35, %v1864_v19 }
 0x475   :  { %v1572_v38 = vpop.f32.mrf.mxu1 }
 0x476   :  { %vm808_vm7 = vcmp.ge.f32.partialorder %v805_v36, 0.0  ;;  %v809_v40 = vmul.f32 0.01, %v805_v36 }
 0x478   :  { %v810_v44 = vsel %vm808_vm7, %v805_v36, %v809_v40 }
 0x479   :  { %v811_v45 = vmul.f32 1.442695, %v810_v44  ;;  %v820_v5 = vrot.slane %v810_v44, 7 }
 0x47b   :  { %1644 = vpow2.f32 %v811_v45 }
 0x488   :  { %v1645_v51 = vpop.eup %1644 }
 0x489   :  { %v814_v53 = vmul.f32 %v1645_v51, %v1870_v27  ;;  %vm813_vm9 = vcmp.eq.f32.partialorder %v1645_v51, 0.0 }
 0x48b   :  { %v816_v0 = vrot.slane %v814_v53, 1 }
 0x48d   :  { %v818_v3 = vadd.f32 %v816_v0, %v810_v44 }
 0x48f   :  { %v823_v7 = vrot.slane %v818_v3, 7 }
 0x491   :  { %v825_v9 = vsel %vm813_vm9, %v820_v5, %v823_v7 }
 0x492   :  { %v845_v10 = vrot.slane %v825_v9, %v1873_v43  ;;  %v1919_v11 = vsel %vm1305_vm8, %v1297_v8, %v825_v9 }
 0x494   :  { %v849_v13 = vmul.f32 %v845_v10, %v840_v47  ;;  %v848_v14 = vmul.f32 %v845_v10, %v836_v49  ;;  %v847_v15 = vmul.f32 %v845_v10, %v832_v4  ;;  %v846_v16 = vmul.f32 %v845_v10, %v828_v12 }
 0x496   :  { %v1925_v48 = vadd.f32 %v849_v13, %v1882_v54  ;;  %v1928_v23 = vadd.f32 %v848_v14, %v1884_v55  ;;  %v1931_v24 = vadd.f32 %v847_v15, %v1886_v56  ;;  %v1934_v25 = vadd.f32 %v846_v16, %v1888_v57  ;;  %v1075_v14 = vpop.permute.xlu1 %1074 }
 0x497   :  { %v1047_v16 = vrot.slane %v1870_v27, 1 }
 0x498   :  { %v861_v28 = vadd.f32 %v1925_v48, %v286_v21  ;;  %v860_v29 = vadd.f32 %v1928_v23, %v285_v22  ;;  %v859_v30 = vadd.f32 %v1931_v24, %v284_v18  ;;  %v858_v55 = vadd.f32 %v1934_v25, %v283_v26  ;;  %v1071_v18 = vpop.permute.xlu0 %1070 }
 0x49a   :  { %vm865_vm10 = vcmp.ge.f32.partialorder %v861_v28, 0.0  ;;  %v869_v54 = vmul.f32 0.01, %v861_v28  ;;  %v868_v31 = vmul.f32 0.01, %v860_v29  ;;  %vm864_vm11 = vcmp.ge.f32.partialorder %v860_v29, 0.0  ;;  %v314_v15 = vpop.permute.xlu1 %313 }
 0x49b   :  { %v867_v56 = vmul.f32 0.01, %v859_v30  ;;  %vm863_vm12 = vcmp.ge.f32.partialorder %v859_v30, 0.0  ;;  %v866_v33 = vmul.f32 0.01, %v858_v55  ;;  %vm862_vm13 = vcmp.ge.f32.partialorder %v858_v55, 0.0 }
 0x49c   :  { %v873_v32 = vsel %vm865_vm10, %v861_v28, %v869_v54  ;;  %v872_v57 = vsel %vm864_vm11, %v860_v29, %v868_v31  ;;  %v1067_v28 = vpop.permute.xlu0 %1066 }
 0x49d   :  { %1573 = vmatprep.subr.mxu1 %v873_v32  ;;  %v871_v34 = vsel %vm863_vm12, %v859_v30, %v867_v56  ;;  %v870_v35 = vsel %vm862_vm13, %v858_v55, %v866_v33 }
 0x49e   :  { %1574 = vmatpush3.msra.mxu1 %v873_v32  ;;  %v309_v21 = vpop.permute.xlu1 %308 }
 0x49f   :  { %1575 = vmatprep.subr.mxu1 %v872_v57 }
 0x4a0   :  { %1576 = vmatpush3.msra.mxu1 %v872_v57  ;;  %v1063_v56 = vpop.permute.xlu0 %1062 }
 0x4a1   :  { %1577 = vmatprep.subr.mxu1 %v871_v34 }
 0x4a2   :  { %1578 = vmatpush3.msra.mxu1 %v871_v34  ;;  %v304_v29 = vpop.permute.xlu1 %303 }
 0x4a3   :  { %1579 = vmatprep.subr.mxu1 %v870_v35 }
 0x4a4   :  { %1580 = vmatpush3.msra.mxu1 %v870_v35 }
 0x4a5   :  { %1582 = vmatmul.mubr.msk.f32.vlgmr.msra.gmra.mxu1 %vm374_vm1, %v1828_v58  ;;  %1587 = vmatprep.subr.mxu1 %v1679_v61 }
 0x4a6   :  { %1584 = vmatprep.mubr.msk.f32.mxu1 %vm374_vm1, %v1830_v59 }
 0x4a9   :  { %1585 = vmatmul.mubr.msk.f32.gmra.mxu1 %vm374_vm1, %v1836_v60 }
 0x4aa   :  { %1595 = vmatprep.mubr.msk.f32.mxu1 %vm1680_vm6, %v1679_v61 }
 0x565   :  { %v1583_v36 = vpop.f32.mrf.mxu1 }
 0x566   :  { %v946_v44 = vadd.f32 %v1583_v36, %v1847_v2  ;;  %v317_v36 = vadd.f32 %v1816_v39, %v304_v29 }
 0x567   :  { %v940_v38 = vpop.f32.mrf.mxu1 }
 0x568   :  { %v941_v49 = vadd.f32 %v940_v38, %v1851_v6  ;;  %v964_v52 = vmul.f32 0.01, %v946_v44  ;;  %vm960_vm0 = vcmp.ge.f32.partialorder %v946_v44, 0.0  ;;  %v299_v38 = vpop.permute.xlu1 %298 }
 0x569   :  { %v1586_v40 = vpop.f32.mrf.mxu1 }
 0x56a   :  { %v956_v45 = vadd.f32 %v1586_v40, %v1843_v62  ;;  %v963_v1 = vmul.f32 0.01, %v941_v49  ;;  %vm959_vm2 = vcmp.ge.f32.partialorder %v941_v49, 0.0  ;;  %v968_v4 = vsel %vm960_vm0, %v946_v44, %v964_v52 }
 0x56b   :  { %v950_v47 = vpop.f32.mrf.mxu1  ;;  %v319_v40 = vadd.f32 %v1820_v42, %v314_v15  ;;  %v318_v44 = vadd.f32 %v309_v21, %v1824_v46  ;;  %v1282_v21 = vrot.slane %v1870_v27, 2  ;;  %vm1311_vm0 = vcmask 1043456  }
 0x56c   :  { %vm962_vm14 = vcmp.ge.f32.partialorder %v956_v45, 0.0  ;;  %v966_v50 = vmul.f32 0.01, %v956_v45  ;;  %v951_v51 = vadd.f32 %v950_v47, %v1845_v63  ;;  %v967_v5 = vsel %vm959_vm2, %v941_v49, %v963_v1 }
 0x56d   :  { %vm1313_vm2 = vcmask 1044480  }
 0x56e   :  { %vm961_vm15 = vcmp.ge.f32.partialorder %v951_v51, 0.0  ;;  %v965_v53 = vmul.f32 0.01, %v951_v51  ;;  %v970_v0 = vsel %vm962_vm14, %v956_v45, %v966_v50 }
 0x56f   :  { %1588 = vmatpush3.msra.mxu1 %v970_v0 }
 0x570   :  { %1589 = vmatprep.subr.mxu1 %v1679_v61  ;;  %v969_v3 = vsel %vm961_vm15, %v951_v51, %v965_v53  ;;  %v316_v51 = vadd.f32 %v299_v38, %v1818_v41 }
 0x571   :  { %1590 = vmatpush3.msra.mxu1 %v969_v3 }
 0x572   :  { %1591 = vmatprep.subr.mxu1 %v1679_v61 }
 0x573   :  { %1592 = vmatpush3.msra.mxu1 %v968_v4 }
 0x574   :  { %1593 = vmatprep.subr.mxu1 %v1679_v61 }
 0x575   :  { %1594 = vmatpush3.msra.mxu1 %v967_v5 }
 0x576   :  { %1596 = vmatmul.mubr.msk.f32.vlgmr.msra.gmra.mxu1 %vm374_vm1, %v1857_v17 }
 0x577   :  { %1606 = vmatprep.mubr.msk.f32.mxu1 %vm374_vm1, %v1812_v37 }
 0x636   :  { %v1037_v7 = vpop.f32.mrf.mxu1 }
 0x637   :  { %v1038_v8 = vadd.f32 %v1037_v7, %v1864_v19 }
 0x638   :  { %v1597_v9 = vpop.f32.mrf.mxu1 }
 0x639   :  { %vm1041_vm3 = vcmp.ge.f32.partialorder %v1038_v8, 0.0  ;;  %v1042_v10 = vmul.f32 0.01, %v1038_v8 }
 0x63b   :  { %v1043_v12 = vsel %vm1041_vm3, %v1038_v8, %v1042_v10  ;;  %vm1315_vm3 = vcmask 1045504  }
 0x63c   :  { %v1044_v13 = vmul.f32 1.442695, %v1043_v12  ;;  %v1055_v30 = vrot.slane %v1043_v12, 7 }
 0x63e   :  { %1646 = vpow2.f32 %v1044_v13 }
 0x64b   :  { %v1647_v20 = vpop.eup %1646 }
 0x64c   :  { %v1049_v22 = vmul.f32 %v1647_v20, %v1047_v16  ;;  %vm1046_vm4 = vcmp.eq.f32.partialorder %v1647_v20, 0.0 }
 0x64e   :  { %v1051_v26 = vrot.slane %v1049_v22, 1 }
 0x650   :  { %v1053_v37 = vadd.f32 %v1051_v26, %v1043_v12 }
 0x652   :  { %v1058_v54 = vrot.slane %v1053_v37, 7 }
 0x654   :  { %v1060_v31 = vsel %vm1046_vm4, %v1055_v30, %v1058_v54  ;;  %vm1317_vm4 = vcmask 1046528  }
 0x655   :  { %v1080_v55 = vrot.slane %v1060_v31, %v1873_v43  ;;  %v1300_v32 = vrot.slane %v1060_v31, 7 }
 0x657   :  { %v1084_v57 = vmul.f32 %v1080_v55, %v1075_v14  ;;  %v1083_v33 = vmul.f32 %v1080_v55, %v1071_v18  ;;  %v1082_v34 = vmul.f32 %v1080_v55, %v1067_v28  ;;  %v1081_v35 = vmul.f32 %v1080_v55, %v1063_v56 }
 0x658   :  { %v1968_v45 = vsel %vm1307_vm5, %v1919_v11, %v1300_v32  ;;  %vm1351_vm5 = vcmask 31744  }
 0x659   :  { %v1088_v47 = vadd.f32 %v1084_v57, %v1925_v48  ;;  %v1087_v43 = vadd.f32 %v1083_v33, %v1928_v23  ;;  %v1086_v49 = vadd.f32 %v1082_v34, %v1931_v24  ;;  %v1085_v50 = vadd.f32 %v1081_v35, %v1934_v25 }
 0x65b   :  { %v1096_v52 = vadd.f32 %v1088_v47, %v319_v40  ;;  %v1095_v39 = vadd.f32 %v1087_v43, %v318_v44  ;;  %v1094_v53 = vadd.f32 %v1086_v49, %v317_v36  ;;  %v1093_v46 = vadd.f32 %v1085_v50, %v316_v51 }
 0x65d   :  { %vm1100_vm7 = vcmp.ge.f32.partialorder %v1096_v52, 0.0  ;;  %v1104_v42 = vmul.f32 0.01, %v1096_v52  ;;  %v1103_v0 = vmul.f32 0.01, %v1095_v39  ;;  %vm1099_vm8 = vcmp.ge.f32.partialorder %v1095_v39, 0.0 }
 0x65e   :  { %v1102_v1 = vmul.f32 0.01, %v1094_v53  ;;  %vm1098_vm9 = vcmp.ge.f32.partialorder %v1094_v53, 0.0  ;;  %v1101_v23 = vmul.f32 0.01, %v1093_v46  ;;  %vm1097_vm10 = vcmp.ge.f32.partialorder %v1093_v46, 0.0 }
 0x65f   :  { %v1108_v11 = vsel %vm1100_vm7, %v1096_v52, %v1104_v42  ;;  %v1107_v48 = vsel %vm1099_vm8, %v1095_v39, %v1103_v0 }
 0x660   :  { %1598 = vmatprep.subr.mxu1 %v1108_v11  ;;  %v1106_v24 = vsel %vm1098_vm9, %v1094_v53, %v1102_v1  ;;  %v1105_v41 = vsel %vm1097_vm10, %v1093_v46, %v1101_v23 }
 0x661   :  { %1599 = vmatpush3.msra.mxu1 %v1108_v11 }
 0x662   :  { %1600 = vmatprep.subr.mxu1 %v1107_v48 }
 0x663   :  { %1601 = vmatpush3.msra.mxu1 %v1107_v48 }
 0x664   :  { %1602 = vmatprep.subr.mxu1 %v1106_v24 }
 0x665   :  { %1603 = vmatpush3.msra.mxu1 %v1106_v24 }
 0x666   :  { %1604 = vmatprep.subr.mxu1 %v1105_v41 }
 0x667   :  { %1605 = vmatpush3.msra.mxu1 %v1105_v41 }
 0x668   :  { %1607 = vmatmul.mubr.msk.f32.vlgmr.msra.gmra.mxu1 %vm374_vm1, %v1828_v58  ;;  %1612 = vmatprep.subr.mxu1 %v1679_v61 }
 0x669   :  { %1609 = vmatprep.mubr.msk.f32.mxu1 %vm374_vm1, %v1830_v59 }
 0x66c   :  { %1610 = vmatmul.mubr.msk.f32.gmra.mxu1 %vm374_vm1, %v1836_v60 }
 0x66d   :  { %1620 = vmatprep.mubr.msk.f32.mxu1 %vm1680_vm6, %v1679_v61 }
 0x728   :  { %v1608_v25 = vpop.f32.mrf.mxu1 }
 0x729   :  { %v1181_v5 = vadd.f32 %v1608_v25, %v1847_v2 }
 0x72a   :  { %v1175_v3 = vpop.f32.mrf.mxu1 }
 0x72b   :  { %v1176_v58 = vadd.f32 %v1175_v3, %v1851_v6  ;;  %v1199_v10 = vmul.f32 0.01, %v1181_v5  ;;  %vm1195_vm13 = vcmp.ge.f32.partialorder %v1181_v5, 0.0 }
 0x72c   :  { %v1611_v4 = vpop.f32.mrf.mxu1 }
 0x72d   :  { %v1191_v7 = vadd.f32 %v1611_v4, %v1843_v62  ;;  %v1198_v13 = vmul.f32 0.01, %v1176_v58  ;;  %vm1194_vm6 = vcmp.ge.f32.partialorder %v1176_v58, 0.0  ;;  %v1203_v62 = vsel %vm1195_vm13, %v1181_v5, %v1199_v10 }
 0x72e   :  { %v1185_v8 = vpop.f32.mrf.mxu1 }
 0x72f   :  { %vm1197_vm11 = vcmp.ge.f32.partialorder %v1191_v7, 0.0  ;;  %v1201_v9 = vmul.f32 0.01, %v1191_v7  ;;  %v1186_v59 = vadd.f32 %v1185_v8, %v1845_v63  ;;  %v1202_v2 = vsel %vm1194_vm6, %v1176_v58, %v1198_v13 }
 0x731   :  { %vm1196_vm12 = vcmp.ge.f32.partialorder %v1186_v59, 0.0  ;;  %v1200_v60 = vmul.f32 0.01, %v1186_v59  ;;  %v1205_v12 = vsel %vm1197_vm11, %v1191_v7, %v1201_v9 }
 0x732   :  { %1613 = vmatpush3.msra.mxu1 %v1205_v12 }
 0x733   :  { %1614 = vmatprep.subr.mxu1 %v1679_v61  ;;  %v1204_v14 = vsel %vm1196_vm12, %v1186_v59, %v1200_v60 }
 0x734   :  { %1615 = vmatpush3.msra.mxu1 %v1204_v14 }
 0x735   :  { %1616 = vmatprep.subr.mxu1 %v1679_v61 }
 0x736   :  { %1617 = vmatpush3.msra.mxu1 %v1203_v62 }
 0x737   :  { %1618 = vmatprep.subr.mxu1 %v1679_v61 }
 0x738   :  { %1619 = vmatpush3.msra.mxu1 %v1202_v2 }
 0x739   :  { %1621 = vmatmul.mubr.msk.f32.vlgmr.msra.gmra.mxu1 %vm374_vm1, %v1857_v17  ;;  %vm1309_vm1 = vcmask 1042432  }
 0x7f9   :  { %v1272_v63 = vpop.f32.mrf.mxu1 }
 0x7fa   :  { %v1273_v6 = vadd.f32 %v1272_v63, %v1864_v19 }
 0x7fb   :  { %v1622_v15 = vpop.f32.mrf.mxu1 }
 0x7fc   :  { %vm1276_vm14 = vcmp.ge.f32.partialorder %v1273_v6, 0.0  ;;  %v1277_v16 = vmul.f32 0.01, %v1273_v6 }
 0x7fe   :  { %v1278_v18 = vsel %vm1276_vm14, %v1273_v6, %v1277_v16 }
 0x7ff   :  { %v1279_v20 = vmul.f32 1.442695, %v1278_v18  ;;  %v1290_v37 = vrot.slane %v1278_v18, 7 }
 0x801   :  { %1648 = vpow2.f32 %v1279_v20 }
 0x80e   :  { %v1649_v22 = vpop.eup %1648 }
 0x80f   :  { %v1284_v26 = vmul.f32 %v1649_v22, %v1282_v21  ;;  %vm1281_vm15 = vcmp.eq.f32.partialorder %v1649_v22, 0.0 }
 0x811   :  { %v1286_v28 = vrot.slane %v1284_v26, 1 }
 0x813   :  { %v1288_v61 = vadd.f32 %v1286_v28, %v1278_v18 }
 0x815   :  { %v1293_v29 = vrot.slane %v1288_v61, 7 }
 0x817   :  { %v1295_v30 = vsel %vm1281_vm15, %v1290_v37, %v1293_v29 }
 0x818   :  { %v1303_v17 = vrot.slane %v1295_v30, 6 }
 0x81a   :  { %v1310_v19 = vsel %vm1309_vm1, %v1968_v45, %v1303_v17 }
 0x81b   :  { %v1312_v54 = vsel %vm1311_vm0, %v1310_v19, 0.0 }
 0x81c   :  { %v1314_v31 = vsel %vm1313_vm2, %v1312_v54, 0.0 }
 0x81d   :  { %v1316_v55 = vsel %vm1315_vm3, %v1314_v31, 0.0 }
 0x81e   :  { %v1318_v27 = vsel %vm1317_vm4, %v1316_v55, 0.0 }
 0x81f   :  { %1319 = vxpose.xlu0.b32.start.end [1/1] (short) %v1318_v27, 128 }
 0x89b   :  { %v1335_v32 = vpop.trf.xlu0 }
 0x89c   :  { %1352 = vst.msk [vmem:[%s2063_s3] sm:$0xff] %vm1351_vm5, %v1335_v32 }
 0x89f   :  { %v1336_v56 = vpop.trf.xlu0 }
 0x8a0   :  { %1353 = vst.msk [vmem:[%s2063_s3 + $0x8] sm:$0xff] %vm1351_vm5, %v1336_v56 }
 0x8a3   :  { %v1337_v57 = vpop.trf.xlu0 }
 0x8a4   :  { %1354 = vst.msk [vmem:[%s2063_s3 + $0x10] sm:$0xff] %vm1351_vm5, %v1337_v57 }
 0x8a7   :  { %v1338_v33 = vpop.trf.xlu0 }
 0x8a8   :  { %1355 = vst.msk [vmem:[%s2063_s3 + $0x18] sm:$0xff] %vm1351_vm5, %v1338_v33 }
 0x8ab   :  { %v1339_v34 = vpop.trf.xlu0 }
 0x8ac   :  { %1356 = vst.msk [vmem:[%s2063_s3 + $0x20] sm:$0xff] %vm1351_vm5, %v1339_v34 }
 0x8af   :  { %v1340_v35 = vpop.trf.xlu0 }
 0x8b0   :  { %1357 = vst.msk [vmem:[%s2063_s3 + $0x28] sm:$0xff] %vm1351_vm5, %v1340_v35 }
 0x8b3   :  { %v1341_v36 = vpop.trf.xlu0 }
 0x8b4   :  { %1358 = vst.msk [vmem:[%s2063_s3 + $0x30] sm:$0xff] %vm1351_vm5, %v1341_v36 }
 0x8b7   :  { %v1342_v38 = vpop.trf.xlu0 }
 0x8b8   :  { %1359 = vst.msk [vmem:[%s2063_s3 + $0x38] sm:$0xff] %vm1351_vm5, %v1342_v38 }
 0x8bb   :  { %v1343_v40 = vpop.trf.xlu0 }
 0x8bc   :  { %1360 = vst.msk [vmem:[%s2063_s3 + $0x40] sm:$0xff] %vm1351_vm5, %v1343_v40 }
 0x8bf   :  { %v1344_v44 = vpop.trf.xlu0 }
 0x8c0   :  { %1361 = vst.msk [vmem:[%s2063_s3 + $0x48] sm:$0xff] %vm1351_vm5, %v1344_v44 }
 0x8c3   :  { %v1345_v45 = vpop.trf.xlu0 }
 0x8c4   :  { %1362 = vst.msk [vmem:[%s2063_s3 + $0x50] sm:$0xff] %vm1351_vm5, %v1345_v45 }
 0x8c7   :  { %v1346_v47 = vpop.trf.xlu0 }
 0x8c8   :  { %1363 = vst.msk [vmem:[%s2063_s3 + $0x58] sm:$0xff] %vm1351_vm5, %v1346_v47 }
 0x8cb   :  { %v1347_v43 = vpop.trf.xlu0 }
 0x8cc   :  { %1364 = vst.msk [vmem:[%s2063_s3 + $0x60] sm:$0xff] %vm1351_vm5, %v1347_v43 }
 0x8cf   :  { %v1348_v49 = vpop.trf.xlu0 }
 0x8d0   :  { %1365 = vst.msk [vmem:[%s2063_s3 + $0x68] sm:$0xff] %vm1351_vm5, %v1348_v49 }
 0x8d3   :  { %v1349_v50 = vpop.trf.xlu0 }
 0x8d4   :  { %1366 = vst.msk [vmem:[%s2063_s3 + $0x70] sm:$0xff] %vm1351_vm5, %v1349_v50 }
 0x8d7   :  { %v1350_v51 = vpop.trf.xlu0 }
 0x8d8   :  { %1367 = vst.msk [vmem:[%s2063_s3 + $0x78] sm:$0xff] %vm1351_vm5, %v1350_v51 }
 0x8d9   :  { %1372 = vsyncpa [#allocation4], 1 }

</bundles_post_ra>
